<compile_context>
chip_gen: v5e
topology: v5e:2x2
jax: 0.10.0
libtpu: 0.0.40
codegen_flags: <defaults>
</compile_context>

<pallas_src>
import numpy as np

import jax
import jax.numpy as jnp
from jax import lax
from jax.experimental import pallas as pl
from jax.experimental.pallas import tpu as pltpu

# ----------------------------- problem sizes --------------------------------
B, C, T, H, K, PAD = 2, 4, 16, 32, 3, 1    # batch, channels, time, hidden


# ------------------------------- kernel --------------------------------------
def _autoencoder_kernel(lens_ref,                       # SMEM (B,) int32
                        x_ref,                          # VMEM (B, C, T)
                        wenc_ref, benc_ref,             # (K*H, C), (H, 1)
                        wdec_ref, bdec_ref,             # (K*C, H), (C, 1)
                        sm1_ref, sp1_ref,               # (T, T) shift matrices
                        recon_ref, mse_ref):            # (B, C, T), (1, 1)
    wenc = wenc_ref[...]                                # (K*H, C)  taps stacked (k, h)
    wdec = wdec_ref[...]                                # (K*C, H)  taps stacked (k, c)
    benc = benc_ref[...]                                # (H, 1) -> broadcast over time lanes
    bdec = bdec_ref[...]                                # (C, 1)
    s_m1 = sm1_ref[...]                                 # right-mul: out[t] = in[t-1], 0 @ t=0
    s_p1 = sp1_ref[...]                                 # right-mul: out[t] = in[t+1], 0 @ t=T-1

    t_idx = lax.broadcasted_iota(jnp.int32, (1, T), 1)  # time index on the lane axis

    sse = jnp.zeros((1, 1), jnp.float32)
    cnt = jnp.zeros((1, 1), jnp.float32)

    for b in range(B):                                  # B=2: tiny static unroll
        x_b = x_ref[b]                                  # (C, T), channels on sublanes

        # ---- encoder: ONE fused channel-mix matmul for all K taps ----------
        ye = jnp.dot(wenc, x_b, preferred_element_type=jnp.float32)   # (K*H, T)
        h = (jnp.dot(ye[0:H, :],       s_m1, preferred_element_type=jnp.float32)
             + ye[H:2 * H, :]
             + jnp.dot(ye[2 * H:3 * H, :], s_p1, preferred_element_type=jnp.float32))
        h = jnp.maximum(h + benc, 0.0)                  # (H, T)

        # ---- decoder (linear) ----------------------------------------------
        yd = jnp.dot(wdec, h, preferred_element_type=jnp.float32)     # (K*C, T)
        r = (jnp.dot(yd[0:C, :],       s_m1, preferred_element_type=jnp.float32)
             + yd[C:2 * C, :]
             + jnp.dot(yd[2 * C:3 * C, :], s_p1, preferred_element_type=jnp.float32))
        r = r + bdec                                    # (C, T), already NCT-ordered
        recon_ref[b] = r

        # ---- masked squared error (valid time steps only) --------------------
        maskf = (t_idx < lens_ref[b]).astype(jnp.float32)             # (1, T)
        diff = (r - x_b) * maskf
        sse = sse + jnp.sum(jnp.sum(diff * diff, axis=1, keepdims=True),
                            axis=0, keepdims=True)
        cnt = cnt + jnp.sum(maskf, axis=1, keepdims=True) * float(C)

    mse_ref[...] = sse / jnp.maximum(cnt, 1.0)          # guard all-zero lengths


# ------------------------------- wrapper --------------------------------------
@jax.jit
def conv_autoencoder_forward(x_nct, lengths, wenc_cat, benc, wdec_cat, bdec,
                             s_m1, s_p1):
    """x_nct: (B, C, T) float32, lengths: (B,) int32.  Returns (mse, recon_nct)."""
    recon, mse2d = pl.pallas_call(
        _autoencoder_kernel,
        out_shape=(jax.ShapeDtypeStruct((B, C, T), jnp.float32),
                   jax.ShapeDtypeStruct((1, 1), jnp.float32)),
        in_specs=[
            pl.BlockSpec(memory_space=pltpu.MemorySpace.SMEM),   # lengths
            pl.BlockSpec(memory_space=pltpu.MemorySpace.VMEM),   # x (B, C, T)
            pl.BlockSpec(memory_space=pltpu.MemorySpace.VMEM),   # wenc_cat (K*H, C)
            pl.BlockSpec(memory_space=pltpu.MemorySpace.VMEM),   # benc (H, 1)
            pl.BlockSpec(memory_space=pltpu.MemorySpace.VMEM),   # wdec_cat (K*C, H)
            pl.BlockSpec(memory_space=pltpu.MemorySpace.VMEM),   # bdec (C, 1)
            pl.BlockSpec(memory_space=pltpu.MemorySpace.VMEM),   # s_m1 (T, T)
            pl.BlockSpec(memory_space=pltpu.MemorySpace.VMEM),   # s_p1 (T, T)
        ],
        out_specs=(pl.BlockSpec(memory_space=pltpu.MemorySpace.VMEM),
                   pl.BlockSpec(memory_space=pltpu.MemorySpace.VMEM)),
    )(lengths, x_nct, wenc_cat, benc, wdec_cat, bdec, s_m1, s_p1)

    return mse2d[0, 0], recon                           # recon already (B, C, T)


# --------------------------- pure-JAX reference --------------------------------
def _reference(x_nct, lengths, w_enc, b_enc, w_dec, b_dec):
    def conv1d_same(x, w, b):
        y = lax.conv_general_dilated(
            x, w, window_strides=(1,), padding=((PAD, PAD),),
            dimension_numbers=("NCH", "OIH", "NCH"))
        return y + b[None, :, None]

    h = jax.nn.relu(conv1d_same(x_nct, w_enc, b_enc))
    r = conv1d_same(h, w_dec, b_dec)
    mask = jnp.arange(T)[None, :] < lengths[:, None]             # (B, T)
    diff = (r - x_nct) * mask[:, None, :]
    mse = jnp.sum(diff * diff) / jnp.maximum(jnp.sum(mask) * C, 1)
    return mse, r


# ---------------------------------- main ---------------------------------------
if __name__ == "__main__":
    key = jax.random.PRNGKey(0)
    k_x, k_we, k_be, k_wd, k_bd = jax.random.split(key, 5)

    # deterministic synthetic parameters (PyTorch Conv1d weight shape: (out, in, K))
    w_enc = 0.1 * jax.random.normal(k_we, (H, C, K), jnp.float32)
    b_enc = 0.1 * jax.random.normal(k_be, (H,), jnp.float32)
    w_dec = 0.1 * jax.random.normal(k_wd, (C, H, K), jnp.float32)
    b_dec = 0.1 * jax.random.normal(k_bd, (C,), jnp.float32)

    # ---- one-time weight / constant packing (outside the jitted forward) ----
    # tap weights concatenated along the output-row axis -> one matmul per layer
    wenc_cat = jnp.transpose(w_enc, (2, 0, 1)).reshape(K * H, C)   # rows (k, h)
    wdec_cat = jnp.transpose(w_dec, (2, 0, 1)).reshape(K * C, H)   # rows (k, c)
    benc = b_enc.reshape(H, 1)
    bdec = b_dec.reshape(C, 1)

    # constant time-shift matrices (right-multiplied): zero boundary columns
    # implement the 'same' zero padding, so no per-tap masks are needed.
    s_m1 = jnp.asarray(np.eye(T, k=1), jnp.float32)     # out[t] = in[t-1]
    s_p1 = jnp.asarray(np.eye(T, k=-1), jnp.float32)    # out[t] = in[t+1]

    x = jax.random.normal(k_x, (B, C, T), jnp.float32)             # NCT, like PyTorch
    lengths = jnp.array([T, T - 6], dtype=jnp.int32)

    mse, recon = conv_autoencoder_forward(x, lengths, wenc_cat, benc,
                                          wdec_cat, bdec, s_m1, s_p1)
    jax.block_until_ready((mse, recon))

    mse_ref_v, recon_ref_v = _reference(x, lengths, w_enc, b_enc, w_dec, b_dec)
    assert jnp.allclose(recon, recon_ref_v, rtol=1e-3, atol=1e-3), "recon mismatch"
    assert jnp.allclose(mse, mse_ref_v, rtol=1e-3, atol=1e-3), "mse mismatch"

    print("KERNEL_OK")
</pallas_src>

<mosaic_0001>
module attributes {stable_mosaic.version = 11 : i64} {
  func.func @_autoencoder_kernel(%arg0: memref<2xi32, #tpu.memory_space<smem>>, %arg1: memref<2x4x16xf32, #tpu.memory_space<vmem>>, %arg2: memref<96x4xf32, #tpu.memory_space<vmem>>, %arg3: memref<32x1xf32, #tpu.memory_space<vmem>>, %arg4: memref<12x32xf32, #tpu.memory_space<vmem>>, %arg5: memref<4x1xf32, #tpu.memory_space<vmem>>, %arg6: memref<16x16xf32, #tpu.memory_space<vmem>>, %arg7: memref<16x16xf32, #tpu.memory_space<vmem>>, %arg8: memref<2x4x16xf32, #tpu.memory_space<vmem>>, %arg9: memref<1x1xf32, #tpu.memory_space<vmem>>) attributes {dimension_semantics = [], scalar_prefetch = 0 : i64, scratch_operands = 0 : i64, tpu.core_type = #tpu.core_type<tc>} {
    %c0 = arith.constant 0 : index
    %c0_0 = arith.constant 0 : index
    %0 = vector.load %arg2[%c0, %c0_0] : memref<96x4xf32, #tpu.memory_space<vmem>>, vector<96x4xf32>
    %c0_1 = arith.constant 0 : index
    %c0_2 = arith.constant 0 : index
    %1 = vector.load %arg4[%c0_1, %c0_2] : memref<12x32xf32, #tpu.memory_space<vmem>>, vector<12x32xf32>
    %c0_3 = arith.constant 0 : index
    %c0_4 = arith.constant 0 : index
    %2 = vector.load %arg3[%c0_3, %c0_4] : memref<32x1xf32, #tpu.memory_space<vmem>>, vector<32x1xf32>
    %c0_5 = arith.constant 0 : index
    %c0_6 = arith.constant 0 : index
    %3 = vector.load %arg5[%c0_5, %c0_6] : memref<4x1xf32, #tpu.memory_space<vmem>>, vector<4x1xf32>
    %c0_7 = arith.constant 0 : index
    %c0_8 = arith.constant 0 : index
    %4 = vector.load %arg6[%c0_7, %c0_8] : memref<16x16xf32, #tpu.memory_space<vmem>>, vector<16x16xf32>
    %c0_9 = arith.constant 0 : index
    %c0_10 = arith.constant 0 : index
    %5 = vector.load %arg7[%c0_9, %c0_10] : memref<16x16xf32, #tpu.memory_space<vmem>>, vector<16x16xf32>
    %6 = tpu.iota {dimensions = array<i32: 1>} : vector<1x16xi32>
    %cst = arith.constant 0.000000e+00 : f32
    %7 = vector.broadcast %cst : f32 to vector<1x1xf32>
    %cst_11 = arith.constant 0.000000e+00 : f32
    %8 = vector.broadcast %cst_11 : f32 to vector<1x1xf32>
    %c0_12 = arith.constant 0 : index
    %c0_13 = arith.constant 0 : index
    %c0_14 = arith.constant 0 : index
    %9 = vector.load %arg1[%c0_12, %c0_13, %c0_14] : memref<2x4x16xf32, #tpu.memory_space<vmem>>, vector<1x4x16xf32>
    %10 = vector.shape_cast %9 : vector<1x4x16xf32> to vector<4x16xf32>
    %cst_15 = arith.constant dense<0.000000e+00> : vector<96x16xf32>
    %11 = tpu.matmul %0, %10, %cst_15 {dimension_numbers = #tpu.dot_dimension_numbers<[1], [0], [0], [1], [0, 0, 1, 1], [], []>} : vector<96x4xf32>, vector<4x16xf32>, vector<96x16xf32> -> vector<96x16xf32>
    %12 = vector.extract_strided_slice %11 {offsets = [0, 0], sizes = [32, 16], strides = [1, 1]} : vector<96x16xf32> to vector<32x16xf32>
    %cst_16 = arith.constant dense<0.000000e+00> : vector<32x16xf32>
    %13 = tpu.matmul %12, %4, %cst_16 {dimension_numbers = #tpu.dot_dimension_numbers<[1], [0], [0], [1], [0, 0, 1, 1], [], []>} : vector<32x16xf32>, vector<16x16xf32>, vector<32x16xf32> -> vector<32x16xf32>
    %14 = vector.extract_strided_slice %11 {offsets = [32, 0], sizes = [32, 16], strides = [1, 1]} : vector<96x16xf32> to vector<32x16xf32>
    %15 = arith.addf %13, %14 : vector<32x16xf32>
    %16 = vector.extract_strided_slice %11 {offsets = [64, 0], sizes = [32, 16], strides = [1, 1]} : vector<96x16xf32> to vector<32x16xf32>
    %cst_17 = arith.constant dense<0.000000e+00> : vector<32x16xf32>
    %17 = tpu.matmul %16, %5, %cst_17 {dimension_numbers = #tpu.dot_dimension_numbers<[1], [0], [0], [1], [0, 0, 1, 1], [], []>} : vector<32x16xf32>, vector<16x16xf32>, vector<32x16xf32> -> vector<32x16xf32>
    %18 = arith.addf %15, %17 : vector<32x16xf32>
    %19 = vector.broadcast %2 : vector<32x1xf32> to vector<32x16xf32>
    %20 = arith.addf %18, %19 : vector<32x16xf32>
    %cst_18 = arith.constant 0.000000e+00 : f32
    %21 = vector.broadcast %cst_18 : f32 to vector<32x16xf32>
    %22 = arith.maximumf %20, %21 : vector<32x16xf32>
    %cst_19 = arith.constant dense<0.000000e+00> : vector<12x16xf32>
    %23 = tpu.matmul %1, %22, %cst_19 {dimension_numbers = #tpu.dot_dimension_numbers<[1], [0], [0], [1], [0, 0, 1, 1], [], []>} : vector<12x32xf32>, vector<32x16xf32>, vector<12x16xf32> -> vector<12x16xf32>
    %24 = vector.extract_strided_slice %23 {offsets = [0, 0], sizes = [4, 16], strides = [1, 1]} : vector<12x16xf32> to vector<4x16xf32>
    %cst_20 = arith.constant dense<0.000000e+00> : vector<4x16xf32>
    %25 = tpu.matmul %24, %4, %cst_20 {dimension_numbers = #tpu.dot_dimension_numbers<[1], [0], [0], [1], [0, 0, 1, 1], [], []>} : vector<4x16xf32>, vector<16x16xf32>, vector<4x16xf32> -> vector<4x16xf32>
    %26 = vector.extract_strided_slice %23 {offsets = [4, 0], sizes = [4, 16], strides = [1, 1]} : vector<12x16xf32> to vector<4x16xf32>
    %27 = arith.addf %25, %26 : vector<4x16xf32>
    %28 = vector.extract_strided_slice %23 {offsets = [8, 0], sizes = [4, 16], strides = [1, 1]} : vector<12x16xf32> to vector<4x16xf32>
    %cst_21 = arith.constant dense<0.000000e+00> : vector<4x16xf32>
    %29 = tpu.matmul %28, %5, %cst_21 {dimension_numbers = #tpu.dot_dimension_numbers<[1], [0], [0], [1], [0, 0, 1, 1], [], []>} : vector<4x16xf32>, vector<16x16xf32>, vector<4x16xf32> -> vector<4x16xf32>
    %30 = arith.addf %27, %29 : vector<4x16xf32>
    %31 = vector.broadcast %3 : vector<4x1xf32> to vector<4x16xf32>
    %32 = arith.addf %30, %31 : vector<4x16xf32>
    %c0_22 = arith.constant 0 : index
    %c0_23 = arith.constant 0 : index
    %c0_24 = arith.constant 0 : index
    %33 = vector.load %arg8[%c0_22, %c0_23, %c0_24] : memref<2x4x16xf32, #tpu.memory_space<vmem>>, vector<1x4x16xf32>
    %34 = vector.shape_cast %33 : vector<1x4x16xf32> to vector<4x16xf32>
    %35 = vector.shape_cast %32 : vector<4x16xf32> to vector<1x4x16xf32>
    tpu.vector_store %arg8[%c0_22, %c0_23, %c0_24], %35 {strides = array<i32>} : memref<2x4x16xf32, #tpu.memory_space<vmem>>, vector<1x4x16xf32>,
    %c0_25 = arith.constant 0 : index
    %36 = memref.load %arg0[%c0_25] : memref<2xi32, #tpu.memory_space<smem>>
    %37 = vector.broadcast %36 : i32 to vector<1x16xi32>
    %38 = arith.cmpi slt, %6, %37 : vector<1x16xi32>
    %39 = arith.extui %38 : vector<1x16xi1> to vector<1x16xi32>
    %40 = arith.sitofp %39 : vector<1x16xi32> to vector<1x16xf32>
    %41 = arith.subf %32, %10 : vector<4x16xf32>
    %42 = vector.broadcast %40 : vector<1x16xf32> to vector<4x16xf32>
    %43 = arith.mulf %41, %42 : vector<4x16xf32>
    %44 = arith.mulf %43, %43 : vector<4x16xf32>
    %cst_26 = arith.constant dense<0.000000e+00> : vector<4xf32>
    %45 = vector.multi_reduction <add>, %44, %cst_26 [1] : vector<4x16xf32> to vector<4xf32>
    %46 = vector.shape_cast %45 : vector<4xf32> to vector<4x1xf32>
    %cst_27 = arith.constant dense<0.000000e+00> : vector<1xf32>
    %47 = vector.multi_reduction <add>, %46, %cst_27 [0] : vector<4x1xf32> to vector<1xf32>
    %48 = vector.shape_cast %47 : vector<1xf32> to vector<1x1xf32>
    %49 = arith.addf %7, %48 : vector<1x1xf32>
    %cst_28 = arith.constant dense<0.000000e+00> : vector<1xf32>
    %50 = vector.multi_reduction <add>, %40, %cst_28 [1] : vector<1x16xf32> to vector<1xf32>
    %51 = vector.shape_cast %50 : vector<1xf32> to vector<1x1xf32>
    %cst_29 = arith.constant 4.000000e+00 : f32
    %52 = vector.broadcast %cst_29 : f32 to vector<1x1xf32>
    %53 = arith.mulf %51, %52 : vector<1x1xf32>
    %54 = arith.addf %8, %53 : vector<1x1xf32>
    %c1 = arith.constant 1 : index
    %c0_30 = arith.constant 0 : index
    %c0_31 = arith.constant 0 : index
    %55 = vector.load %arg1[%c1, %c0_30, %c0_31] : memref<2x4x16xf32, #tpu.memory_space<vmem>>, vector<1x4x16xf32>
    %56 = vector.shape_cast %55 : vector<1x4x16xf32> to vector<4x16xf32>
    %cst_32 = arith.constant dense<0.000000e+00> : vector<96x16xf32>
    %57 = tpu.matmul %0, %56, %cst_32 {dimension_numbers = #tpu.dot_dimension_numbers<[1], [0], [0], [1], [0, 0, 1, 1], [], []>} : vector<96x4xf32>, vector<4x16xf32>, vector<96x16xf32> -> vector<96x16xf32>
    %58 = vector.extract_strided_slice %57 {offsets = [0, 0], sizes = [32, 16], strides = [1, 1]} : vector<96x16xf32> to vector<32x16xf32>
    %cst_33 = arith.constant dense<0.000000e+00> : vector<32x16xf32>
    %59 = tpu.matmul %58, %4, %cst_33 {dimension_numbers = #tpu.dot_dimension_numbers<[1], [0], [0], [1], [0, 0, 1, 1], [], []>} : vector<32x16xf32>, vector<16x16xf32>, vector<32x16xf32> -> vector<32x16xf32>
    %60 = vector.extract_strided_slice %57 {offsets = [32, 0], sizes = [32, 16], strides = [1, 1]} : vector<96x16xf32> to vector<32x16xf32>
    %61 = arith.addf %59, %60 : vector<32x16xf32>
    %62 = vector.extract_strided_slice %57 {offsets = [64, 0], sizes = [32, 16], strides = [1, 1]} : vector<96x16xf32> to vector<32x16xf32>
    %cst_34 = arith.constant dense<0.000000e+00> : vector<32x16xf32>
    %63 = tpu.matmul %62, %5, %cst_34 {dimension_numbers = #tpu.dot_dimension_numbers<[1], [0], [0], [1], [0, 0, 1, 1], [], []>} : vector<32x16xf32>, vector<16x16xf32>, vector<32x16xf32> -> vector<32x16xf32>
    %64 = arith.addf %61, %63 : vector<32x16xf32>
    %65 = vector.broadcast %2 : vector<32x1xf32> to vector<32x16xf32>
    %66 = arith.addf %64, %65 : vector<32x16xf32>
    %cst_35 = arith.constant 0.000000e+00 : f32
    %67 = vector.broadcast %cst_35 : f32 to vector<32x16xf32>
    %68 = arith.maximumf %66, %67 : vector<32x16xf32>
    %cst_36 = arith.constant dense<0.000000e+00> : vector<12x16xf32>
    %69 = tpu.matmul %1, %68, %cst_36 {dimension_numbers = #tpu.dot_dimension_numbers<[1], [0], [0], [1], [0, 0, 1, 1], [], []>} : vector<12x32xf32>, vector<32x16xf32>, vector<12x16xf32> -> vector<12x16xf32>
    %70 = vector.extract_strided_slice %69 {offsets = [0, 0], sizes = [4, 16], strides = [1, 1]} : vector<12x16xf32> to vector<4x16xf32>
    %cst_37 = arith.constant dense<0.000000e+00> : vector<4x16xf32>
    %71 = tpu.matmul %70, %4, %cst_37 {dimension_numbers = #tpu.dot_dimension_numbers<[1], [0], [0], [1], [0, 0, 1, 1], [], []>} : vector<4x16xf32>, vector<16x16xf32>, vector<4x16xf32> -> vector<4x16xf32>
    %72 = vector.extract_strided_slice %69 {offsets = [4, 0], sizes = [4, 16], strides = [1, 1]} : vector<12x16xf32> to vector<4x16xf32>
    %73 = arith.addf %71, %72 : vector<4x16xf32>
    %74 = vector.extract_strided_slice %69 {offsets = [8, 0], sizes = [4, 16], strides = [1, 1]} : vector<12x16xf32> to vector<4x16xf32>
    %cst_38 = arith.constant dense<0.000000e+00> : vector<4x16xf32>
    %75 = tpu.matmul %74, %5, %cst_38 {dimension_numbers = #tpu.dot_dimension_numbers<[1], [0], [0], [1], [0, 0, 1, 1], [], []>} : vector<4x16xf32>, vector<16x16xf32>, vector<4x16xf32> -> vector<4x16xf32>
    %76 = arith.addf %73, %75 : vector<4x16xf32>
    %77 = vector.broadcast %3 : vector<4x1xf32> to vector<4x16xf32>
    %78 = arith.addf %76, %77 : vector<4x16xf32>
    %c1_39 = arith.constant 1 : index
    %c0_40 = arith.constant 0 : index
    %c0_41 = arith.constant 0 : index
    %79 = vector.load %arg8[%c1_39, %c0_40, %c0_41] : memref<2x4x16xf32, #tpu.memory_space<vmem>>, vector<1x4x16xf32>
    %80 = vector.shape_cast %79 : vector<1x4x16xf32> to vector<4x16xf32>
    %81 = vector.shape_cast %78 : vector<4x16xf32> to vector<1x4x16xf32>
    tpu.vector_store %arg8[%c1_39, %c0_40, %c0_41], %81 {strides = array<i32>} : memref<2x4x16xf32, #tpu.memory_space<vmem>>, vector<1x4x16xf32>,
    %c1_42 = arith.constant 1 : index
    %82 = memref.load %arg0[%c1_42] : memref<2xi32, #tpu.memory_space<smem>>
    %83 = vector.broadcast %82 : i32 to vector<1x16xi32>
    %84 = arith.cmpi slt, %6, %83 : vector<1x16xi32>
    %85 = arith.extui %84 : vector<1x16xi1> to vector<1x16xi32>
    %86 = arith.sitofp %85 : vector<1x16xi32> to vector<1x16xf32>
    %87 = arith.subf %78, %56 : vector<4x16xf32>
    %88 = vector.broadcast %86 : vector<1x16xf32> to vector<4x16xf32>
    %89 = arith.mulf %87, %88 : vector<4x16xf32>
    %90 = arith.mulf %89, %89 : vector<4x16xf32>
    %cst_43 = arith.constant dense<0.000000e+00> : vector<4xf32>
    %91 = vector.multi_reduction <add>, %90, %cst_43 [1] : vector<4x16xf32> to vector<4xf32>
    %92 = vector.shape_cast %91 : vector<4xf32> to vector<4x1xf32>
    %cst_44 = arith.constant dense<0.000000e+00> : vector<1xf32>
    %93 = vector.multi_reduction <add>, %92, %cst_44 [0] : vector<4x1xf32> to vector<1xf32>
    %94 = vector.shape_cast %93 : vector<1xf32> to vector<1x1xf32>
    %95 = arith.addf %49, %94 : vector<1x1xf32>
    %cst_45 = arith.constant dense<0.000000e+00> : vector<1xf32>
    %96 = vector.multi_reduction <add>, %86, %cst_45 [1] : vector<1x16xf32> to vector<1xf32>
    %97 = vector.shape_cast %96 : vector<1xf32> to vector<1x1xf32>
    %cst_46 = arith.constant 4.000000e+00 : f32
    %98 = vector.broadcast %cst_46 : f32 to vector<1x1xf32>
    %99 = arith.mulf %97, %98 : vector<1x1xf32>
    %100 = arith.addf %54, %99 : vector<1x1xf32>
    %cst_47 = arith.constant 1.000000e+00 : f32
    %101 = vector.broadcast %cst_47 : f32 to vector<1x1xf32>
    %102 = arith.maximumf %100, %101 : vector<1x1xf32>
    %103 = arith.divf %95, %102 : vector<1x1xf32>
    %c0_48 = arith.constant 0 : index
    %c0_49 = arith.constant 0 : index
    %104 = vector.load %arg9[%c0_48, %c0_49] : memref<1x1xf32, #tpu.memory_space<vmem>>, vector<1x1xf32>
    tpu.vector_store %arg9[%c0_48, %c0_49], %103 {strides = array<i32>} : memref<1x1xf32, #tpu.memory_space<vmem>>, vector<1x1xf32>,
    return
  }
}

</mosaic_0001>

<bundles_post_ra>
// kernel: conv_autoencoder_forward.1
= control target key start
LH: loop header
LB: loop body
LE: loop exit
PB: predicated region body
PF: predicated region fallthrough
CT: control target
= control target key end

     0   :  { %15 = vsyncpa [#allocation4], 0  ;;  %s1122_s0 = inlined_call_operand.vmem [shape: s32[2], index: 0, kind: input, shape index: {}]   ;;  %s1123_s1 = inlined_call_operand.vmem [shape: f32[2,4,16], index: 1, kind: input, shape index: {}]   ;;  %s1124_s2 = inlined_call_operand.vmem [shape: f32[96,4], index: 2, kind: input, shape index: {}]   ;;  %s1125_s3 = inlined_call_operand.vmem [shape: f32[32,1], index: 3, kind: input, shape index: {}]   ;;  %s1126_s4 = inlined_call_operand.vmem [shape: f32[12,32], index: 4, kind: input, shape index: {}]   ;;  %s1127_s5 = inlined_call_operand.vmem [shape: f32[4,1], index: 5, kind: input, shape index: {}]   ;;  %s1128_s6 = inlined_call_operand.vmem [shape: f32[16,16], index: 6, kind: input, shape index: {}]   ;;  %s1129_s7 = inlined_call_operand.vmem [shape: f32[16,16], index: 7, kind: input, shape index: {}]   ;;  %s1130_s8 = inlined_call_operand.hbm [shape: f32[2,4,16], index: 8, kind: output, shape index: {0}]   ;;  %s1131_s9 = inlined_call_operand.hbm [shape: f32[1,1], index: 9, kind: output, shape index: {1}]  }
   0x1   :  { %16 = vsyncpa [#allocation3], 0 }
   0x2   :  { %17 = vsyncpa [#allocation7], 0  ;;  %s23_s11 = sshll.u32 %s1122_s0, 4  ;;  %s830_s12 = smov [#allocation2]   ;;  %s24_s11 = int_to_ptr.vmem [resolvable:$true] %s23_s11 }
   0x3   :  { %26 = dma.vmem_to_smem %s24_s11, 16, %s830_s12, [#allocation4]  }
   0x4   :  { %824 = dma.done.wait [#allocation4], 16  }
   0x5   :  { %825 = vsyncadd [#allocation4], 4294967280 }
   0x6   :  { %45 = sfence }
   0x7   :  { %v893_v0 = vld [vmem:[%s1123_s1] sm:$0xf]  ;;  %vm109_vm0 = vcmask 1043456   ;;  %vm72_vm1 = vcmask 31744   ;;  %v907_v2 = vld [vmem:[%s1124_s2 + $0x8] sm:$0xff]  ;;  %v914_v3 = vld [vmem:[%s1124_s2 + $0x10] sm:$0xff] }
   0x8   :  { %v898_v1 = vld [vmem:[%s1124_s2] sm:$0xff]  ;;  %696 = vmatpush.msk.msra.mxu0 %vm109_vm0, %v893_v0  ;;  %v921_v4 = vld [vmem:[%s1124_s2 + $0x18] sm:$0xff]  ;;  %v935_v6 = vld [vmem:[%s1124_s2 + $0x28] sm:$0xff]  ;;  %vm166_vm2 = vcmask 130048   ;;  %v831_v24 = vmov 0   ;;  %vm281_vm3 = vcmask 261120  }
   0x9   :  { %697 = vmatmul.msk.f32.vlgmr.msra.gmra.mxu0 %vm72_vm1, %v898_v1  ;;  %v928_v5 = vld [vmem:[%s1124_s2 + $0x20] sm:$0xff]  ;;  %v942_v7 = vld [vmem:[%s1124_s2 + $0x30] sm:$0xff]  ;;  %v949_v8 = vld [vmem:[%s1124_s2 + $0x38] sm:$0xff]  ;;  %760 = vset.pattern.permute.xlu1 %v831_v24  ;;  %vm366_vm5 = vcmask 125952   ;;  %s748_s13 = sld [smem:[#allocation2 + $0x1]]  ;;  %s667_s16 = sshll.u32 %s1130_s8, 4  ;;  %s668_s16 = int_to_ptr.hbm [resolvable:$true] %s667_s16 }
   0xa   :  { %v956_v9 = vld [vmem:[%s1128_s6 + $0x8] sm:$0xff]  ;;  %v54_v10 = vld [vmem:[%s1124_s2 + $0x40] sm:$0xff]  ;;  %v56_v12 = vld [vmem:[%s1124_s2 + $0x50] sm:$0xff]  ;;  %759 = vset.pattern.permute.xlu0 %v831_v24  ;;  %761 = vset.pattern.permute.xlu2 %v831_v24  ;;  %s833_s0 = smov [#allocation5]   ;;  %s834_s18 = smov 64   ;;  %vm659_vm11 = vcmask 0  }
   0xb   :  { %193 = vmatpush.msra.mxu2 %v956_v9  ;;  %750 = vmatpush.msra.mxu3 %v956_v9  ;;  %v55_v11 = vld [vmem:[%s1124_s2 + $0x48] sm:$0xff]  ;;  %v57_v13 = vld [vmem:[%s1124_s2 + $0x58] sm:$0xff]  ;;  %v979_v14 = vld [vmem:[%s1128_s6] sm:$0xff]  ;;  %s665_s17 = sshll.u32 %s833_s0, 4  ;;  %s835_s19 = smov 4   ;;  %s666_s17 = int_to_ptr.vmem [resolvable:$true] %s665_s17 }
   0xc   :  { %v989_v19 = vld [vmem:[%s1129_s7 + $0x8] sm:$0xff]  ;;  %v996_v20 = vld [vmem:[%s1129_s7] sm:$0xff]  ;;  %v63_v29 = vld [vmem:[%s1125_s3 + $0x18] sm:$0xff]  ;;  %s836_s8 = smov [#allocation6]   ;;  %s681_s21 = sshll.u32 %s1131_s9, 4  ;;  %s682_s21 = int_to_ptr.hbm [resolvable:$true] %s681_s21 }
   0xd   :  { %194 = vmatpush.msra.mxu2 %v979_v14  ;;  %751 = vmatpush.msra.mxu3 %v979_v14  ;;  %v61_v23 = vld [vmem:[%s1125_s3 + $0x8] sm:$0xff]  ;;  %v60_v26 = vld [vmem:[%s1125_s3] sm:$0xff]  ;;  %v62_v30 = vld [vmem:[%s1125_s3 + $0x10] sm:$0xff]  ;;  %s679_s2 = sshll.u32 %s836_s8, 4  ;;  %s680_s2 = int_to_ptr.vmem [resolvable:$true] %s679_s2 }
   0xe   :  { %260 = vperm.xlu1 %760, %v61_v23   ;;  %v1012_v28 = vld [vmem:[%s1123_s1 + $0x4] sm:$0xf]  ;;  %270 = vperm.xlu0 %759, %v63_v29   ;;  %v832_v29 = vmov 0.0  }
   0xf   :  { %234 = vmatpush.msrb.mxu2 %v989_v19  ;;  %723 = vmatpush.msk.msra.mxu1 %vm109_vm0, %v1012_v28 }
  0x10   :  { %724 = vmatmul.msk.f32.vlgmr.msra.gmra.mxu1 %vm72_vm1, %v898_v1 }
  0x11   :  { %698 = vmatmul.msk.f32.gmra.mxu0 %vm72_vm1, %v907_v2  ;;  %235 = vmatpush.msrb.mxu2 %v996_v20 }
  0x16   :  { %255 = vperm.xlu1 %760, %v60_v26   ;;  %265 = vperm.xlu0 %759, %v62_v30  }
  0x18   :  { %725 = vmatmul.msk.f32.gmra.mxu1 %vm72_vm1, %v907_v2 }
  0x19   :  { %699 = vmatmul.msk.f32.gmra.mxu0 %vm72_vm1, %v914_v3 }
  0x20   :  { %726 = vmatmul.msk.f32.gmra.mxu1 %vm72_vm1, %v914_v3 }
  0x21   :  { %700 = vmatmul.msk.f32.gmra.mxu0 %vm72_vm1, %v921_v4 }
  0x28   :  { %727 = vmatmul.msk.f32.gmra.mxu1 %vm72_vm1, %v921_v4  ;;  %v1066_v4 = vld [vmem:[%s1126_s4] sm:$0xff] }
  0x29   :  { %701 = vmatmul.msk.f32.gmra.mxu0 %vm72_vm1, %v928_v5 }
  0x30   :  { %728 = vmatmul.msk.f32.gmra.mxu1 %vm72_vm1, %v928_v5  ;;  %v1076_v5 = vld [vmem:[%s1126_s4 + $0x8] sm:$0xf] }
  0x31   :  { %702 = vmatmul.msk.f32.gmra.mxu0 %vm72_vm1, %v935_v6 }
  0x38   :  { %729 = vmatmul.msk.f32.gmra.mxu1 %vm72_vm1, %v935_v6 }
  0x39   :  { %703 = vmatmul.msk.f32.gmra.mxu0 %vm72_vm1, %v942_v7 }
  0x40   :  { %730 = vmatmul.msk.f32.gmra.mxu1 %vm72_vm1, %v942_v7 }
  0x41   :  { %704 = vmatmul.msk.f32.gmra.mxu0 %vm72_vm1, %v949_v8 }
  0x48   :  { %731 = vmatmul.msk.f32.gmra.mxu1 %vm72_vm1, %v949_v8 }
  0x49   :  { %705 = vmatmul.msk.f32.gmra.mxu0 %vm72_vm1, %v54_v10 }
  0x50   :  { %732 = vmatmul.msk.f32.gmra.mxu1 %vm72_vm1, %v54_v10 }
  0x51   :  { %706 = vmatmul.msk.f32.gmra.mxu0 %vm72_vm1, %v55_v11 }
  0x58   :  { %733 = vmatmul.msk.f32.gmra.mxu1 %vm72_vm1, %v55_v11 }
  0x59   :  { %707 = vmatmul.msk.f32.gmra.mxu0 %vm72_vm1, %v56_v12 }
  0x60   :  { %734 = vmatmul.msk.f32.gmra.mxu1 %vm72_vm1, %v56_v12 }
  0x61   :  { %708 = vmatmul.msk.f32.gmra.mxu0 %vm72_vm1, %v57_v13 }
  0x68   :  { %735 = vmatmul.msk.f32.gmra.mxu1 %vm72_vm1, %v57_v13 }
  0x80   :  { %v1049_v44 = vpop.permute.xlu0 %270  ;;  %v1052_v46 = vpop.permute.xlu1 %260 }
  0x86   :  { %v130_v15 = vpop.f32.mrf.mxu0 }
  0x87   :  { %709 = vmatmul.msk.f32.vlgmr.msra.gmra.mxu2 %vm166_vm2, %v130_v15  ;;  %v64_v15 = vld [vmem:[%s1127_s5] sm:$0xf]  ;;  %s368_s5 = sld [smem:[#allocation2]] }
  0x88   :  { %476 = vmatpush.msra.mxu2 %v956_v9  ;;  %v1054_v52 = vpop.permute.xlu0 %265  ;;  %v1059_v60 = vpop.permute.xlu1 %255  ;;  %362 = vperm.xlu2 %761, %v64_v15  }
  0x8a   :  { %477 = vmatpush.msra.mxu2 %v979_v14 }
  0x8d   :  { %v414_v36 = vpop.f32.mrf.mxu1  ;;  %v369_v24 = vstv %s368_s5 }
  0x8e   :  { %v133_v16 = vpop.f32.mrf.mxu0 }
  0x8f   :  { %710 = vmatmul.msk.f32.gmra.mxu2 %vm166_vm2, %v133_v16 }
  0x95   :  { %v417_v38 = vpop.f32.mrf.mxu1 }
  0x96   :  { %v136_v17 = vpop.f32.mrf.mxu0 }
  0x97   :  { %711 = vmatmul.msk.f32.vlgmr.msra.gmra.mxu3 %vm166_vm2, %v136_v17 }
  0x9d   :  { %v420_v40 = vpop.f32.mrf.mxu1 }
  0x9e   :  { %v139_v18 = vpop.f32.mrf.mxu0 }
  0x9f   :  { %712 = vmatmul.msk.f32.gmra.mxu3 %vm166_vm2, %v139_v18 }
  0xa5   :  { %v423_v43 = vpop.f32.mrf.mxu1 }
  0xa6   :  { %v998_v21 = vpop.f32.mrf.mxu0 }
  0xad   :  { %v426_v6 = vpop.f32.mrf.mxu1 }
  0xae   :  { %v145_v22 = vpop.f32.mrf.mxu0 }
  0xb5   :  { %v429_v7 = vpop.f32.mrf.mxu1 }
  0xb6   :  { %v148_v25 = vpop.f32.mrf.mxu0 }
  0xbd   :  { %v432_v8 = vpop.f32.mrf.mxu1 }
  0xbe   :  { %v151_v27 = vpop.f32.mrf.mxu0 }
  0xc5   :  { %v435_v10 = vpop.f32.mrf.mxu1 }
  0xc6   :  { %v154_v31 = vpop.f32.mrf.mxu0 }
  0xc7   :  { %713 = vmatmul.msk.f32.vlgmr.msrb.gmra.mxu2 %vm166_vm2, %v154_v31 }
  0xcd   :  { %v438_v13 = vpop.f32.mrf.mxu1 }
  0xce   :  { %v157_v32 = vpop.f32.mrf.mxu0 }
  0xcf   :  { %714 = vmatmul.msk.f32.gmra.mxu2 %vm166_vm2, %v157_v32 }
  0xd5   :  { %v441_v16 = vpop.f32.mrf.mxu1 }
  0xd6   :  { %v160_v33 = vpop.f32.mrf.mxu0 }
  0xd7   :  { %715 = vmatmul.msk.f32.gmra.mxu2 %vm166_vm2, %v160_v33 }
  0xdd   :  { %v444_v17 = vpop.f32.mrf.mxu1 }
  0xde   :  { %v163_v34 = vpop.f32.mrf.mxu0 }
  0xdf   :  { %716 = vmatmul.msk.f32.gmra.mxu2 %vm166_vm2, %v163_v34 }
  0xe5   :  { %v447_v18 = vpop.f32.mrf.mxu1 }
  0xe7   :  { %736 = vmatmul.msk.f32.vlgmr.msra.gmra.mxu2 %vm166_vm2, %v414_v36 }
  0xef   :  { %737 = vmatmul.msk.f32.gmra.mxu2 %vm166_vm2, %v417_v38 }
  0xf7   :  { %738 = vmatmul.msk.f32.gmra.mxu2 %vm166_vm2, %v420_v40 }
  0xff   :  { %739 = vmatmul.msk.f32.gmra.mxu2 %vm166_vm2, %v423_v43 }
 0x10a   :  { %v196_v35 = vpop.f32.mrf.mxu2 }
 0x10b   :  { %v197_v54 = vadd.f32 %v196_v35, %v998_v21 }
 0x112   :  { %v199_v37 = vpop.f32.mrf.mxu2 }
 0x113   :  { %v200_v49 = vadd.f32 %v199_v37, %v145_v22 }
 0x11a   :  { %v202_v42 = vpop.f32.mrf.mxu3 }
 0x11b   :  { %v203_v48 = vadd.f32 %v202_v42, %v148_v25 }
 0x122   :  { %v205_v47 = vpop.f32.mrf.mxu3 }
 0x123   :  { %v206_v50 = vadd.f32 %v205_v47, %v151_v27 }
 0x14a   :  { %v237_v39 = vpop.f32.mrf.mxu2 }
 0x14b   :  { %v249_v57 = vadd.f32 %v237_v39, %v197_v54 }
 0x14d   :  { %v273_v63 = vadd.f32 %v1059_v60, %v249_v57 }
 0x14f   :  { %v277_v3 = vmax.f32 %v273_v63, 0.0 }
 0x152   :  { %v240_v41 = vpop.f32.mrf.mxu2 }
 0x153   :  { %v250_v55 = vadd.f32 %v240_v41, %v200_v49 }
 0x155   :  { %v274_v62 = vadd.f32 %v1052_v46, %v250_v55 }
 0x157   :  { %v278_v2 = vmax.f32 %v274_v62, 0.0 }
 0x15a   :  { %v243_v45 = vpop.f32.mrf.mxu2 }
 0x15b   :  { %v251_v51 = vadd.f32 %v243_v45, %v203_v48 }
 0x15d   :  { %v275_v58 = vadd.f32 %v1054_v52, %v251_v51 }
 0x15f   :  { %v279_v1 = vmax.f32 %v275_v58, 0.0 }
 0x162   :  { %v246_v53 = vpop.f32.mrf.mxu2 }
 0x163   :  { %v252_v56 = vadd.f32 %v246_v53, %v206_v50 }
 0x165   :  { %v276_v59 = vadd.f32 %v1049_v44, %v252_v56 }
 0x167   :  { %v280_v61 = vmax.f32 %v276_v59, 0.0 }
 0x169   :  { %300 = vmatpush.msrb.mxu3 %v280_v61 }
 0x16a   :  { %v479_v23 = vpop.f32.mrf.mxu2 }
 0x16b   :  { %301 = vmatpush.msrb.mxu3 %v279_v1  ;;  %v480_v48 = vadd.f32 %v479_v23, %v426_v6 }
 0x16d   :  { %302 = vmatpush.msrb.mxu3 %v278_v2 }
 0x16f   :  { %303 = vmatpush.msrb.mxu3 %v277_v3 }
 0x170   :  { %717 = vmatmul.msk.f32.vlgmr.msrb.gmra.mxu3 %vm281_vm3, %v1066_v4 }
 0x171   :  { %330 = vmatpush.msra.mxu3 %v956_v9 }
 0x172   :  { %v482_v33 = vpop.f32.mrf.mxu2 }
 0x173   :  { %331 = vmatpush.msra.mxu3 %v979_v14  ;;  %v483_v42 = vadd.f32 %v482_v33, %v429_v7 }
 0x175   :  { %353 = vmatpush.msrb.mxu3 %v989_v19 }
 0x177   :  { %354 = vmatpush.msrb.mxu3 %v996_v20 }
 0x178   :  { %718 = vmatmul.msk.f32.gmra.mxu3 %vm281_vm3, %v1076_v5 }
 0x17a   :  { %v485_v38 = vpop.f32.mrf.mxu2 }
 0x17b   :  { %v486_v41 = vadd.f32 %v485_v38, %v432_v8 }
 0x182   :  { %v488_v40 = vpop.f32.mrf.mxu2 }
 0x183   :  { %v489_v43 = vadd.f32 %v488_v40, %v435_v10 }
 0x1f3   :  { %v305_v11 = vpop.f32.mrf.mxu3 }
 0x1f4   :  { %719 = vmatmul.msk.f32.vlgmr.msra.gmra.mxu3 %vm166_vm2, %v305_v11  ;;  %v312_v22 = vrot.slane %v305_v11, 4 }
 0x1f5   :  { %517 = vmatpush.msra.mxu3 %v989_v19 }
 0x1f7   :  { %518 = vmatpush.msra.mxu3 %v996_v20 }
 0x1fb   :  { %v308_v12 = vpop.f32.mrf.mxu3 }
 0x1fc   :  { %720 = vmatmul.msk.f32.vlgmr.msrb.gmra.mxu3 %vm166_vm2, %v308_v12 }
 0x1fd   :  { %586 = vmatpush.msrb.mxu3 %v956_v9  ;;  %v69_v9 = vlaneseq }
 0x1ff   :  { %587 = vmatpush.msrb.mxu3 %v979_v14  ;;  %v70_v14 = vand.u32 127, %v69_v9 }
 0x201   :  { %vm370_vm4 = vcmp.lt.s32.totalorder %v70_v14, %v369_v24 }
 0x202   :  { %v721_v30 = vsel %vm370_vm4, 1.0, %v832_v29 }
 0x203   :  { %v387_v61 = vsel %vm166_vm2, %v721_v30, 0.0 }
 0x204   :  { %740 = vmatmul.msk.f32.vlgmr.msra.gmra.mxu3 %vm166_vm2, %v438_v13  ;;  %388 = vadd.xlane.f32.xlu2 %v387_v61 }
 0x205   :  { %609 = vmatpush.msra.mxu3 %v989_v19  ;;  %v363_v19 = vpop.permute.xlu2 %362 }
 0x207   :  { %610 = vmatpush.msra.mxu3 %v996_v20 }
 0x20c   :  { %741 = vmatmul.msk.f32.gmra.mxu3 %vm166_vm2, %v441_v16 }
 0x214   :  { %742 = vmatmul.msk.f32.gmra.mxu3 %vm166_vm2, %v444_v17 }
 0x21c   :  { %743 = vmatmul.msk.f32.gmra.mxu3 %vm166_vm2, %v447_v18 }
 0x277   :  { %v333_v21 = vpop.f32.mrf.mxu3  ;;  %v389_v11 = vpop.xlane.xlu2 %388 }
 0x278   :  { %v334_v25 = vadd.f32 %v333_v21, %v312_v22  ;;  %v390_v13 = vmul.f32 4.0, %v389_v11 }
 0x27f   :  { %v356_v26 = vpop.f32.mrf.mxu3 }
 0x280   :  { %v359_v27 = vadd.f32 %v356_v26, %v334_v25 }
 0x282   :  { %v365_v20 = vadd.f32 %v363_v19, %v359_v27 }
 0x284   :  { %367 = vst.msk [vmem:[#allocation5] sm:$0xf] %vm366_vm5, %v365_v20  ;;  %v373_v31 = vsub.f32 %v365_v20, %v893_v0 }
 0x286   :  { %v374_v32 = vmul.f32 %v721_v30, %v373_v31 }
 0x287   :  { %v520_v34 = vpop.f32.mrf.mxu3 }
 0x288   :  { %v375_v35 = vmul.f32 %v374_v32, %v374_v32  ;;  %v532_v0 = vadd.f32 %v520_v34, %v480_v48 }
 0x28a   :  { %v376_v36 = vsel %vm366_vm5, %v375_v35, 0.0  ;;  %v536_v56 = vadd.f32 %v532_v0, %v1059_v60 }
 0x28b   :  { %377 = vadd.xlane.f32.xlu1 %v376_v36 }
 0x28c   :  { %v540_v59 = vmax.f32 %v536_v56, 0.0 }
 0x28f   :  { %v523_v37 = vpop.f32.mrf.mxu3 }
 0x290   :  { %v533_v49 = vadd.f32 %v523_v37, %v483_v42 }
 0x292   :  { %v537_v54 = vadd.f32 %v533_v49, %v1052_v46  ;;  %v620_v46 = vstv %s748_s13 }
 0x293   :  { %vm621_vm6 = vcmp.lt.s32.totalorder %v70_v14, %v620_v46 }
 0x294   :  { %v541_v58 = vmax.f32 %v537_v54, 0.0  ;;  %v749_v60 = vsel %vm621_vm6, 1.0, %v832_v29 }
 0x295   :  { %v638_v62 = vsel %vm166_vm2, %v749_v60, 0.0 }
 0x296   :  { %639 = vadd.xlane.f32.xlu0 %v638_v62 }
 0x297   :  { %v526_v39 = vpop.f32.mrf.mxu3 }
 0x298   :  { %v534_v45 = vadd.f32 %v526_v39, %v486_v41 }
 0x29a   :  { %v538_v51 = vadd.f32 %v534_v45, %v1054_v52 }
 0x29c   :  { %v542_v57 = vmax.f32 %v538_v51, 0.0 }
 0x29f   :  { %v529_v47 = vpop.f32.mrf.mxu3 }
 0x2a0   :  { %v535_v50 = vadd.f32 %v529_v47, %v489_v43 }
 0x2a2   :  { %v539_v53 = vadd.f32 %v535_v50, %v1049_v44 }
 0x2a4   :  { %v543_v55 = vmax.f32 %v539_v53, 0.0 }
 0x2a6   :  { %556 = vmatpush.msrb.mxu2 %v543_v55 }
 0x2a8   :  { %557 = vmatpush.msrb.mxu2 %v542_v57 }
 0x2aa   :  { %558 = vmatpush.msrb.mxu2 %v541_v58 }
 0x2ac   :  { %559 = vmatpush.msrb.mxu2 %v540_v59 }
 0x2ad   :  { %744 = vmatmul.msk.f32.vlgmr.msrb.gmra.mxu2 %vm281_vm3, %v1066_v4 }
 0x2b5   :  { %745 = vmatmul.msk.f32.gmra.mxu2 %vm281_vm3, %v1076_v5 }
 0x2fe   :  { %v378_v17 = vpop.xlane.xlu1 %377 }
 0x2ff   :  { %v379_v18 = vsel %vm109_vm0, %v378_v17, 0.0 }
 0x300   :  { %v380_v21 = vrot.slane %v379_v18, 4 }
 0x302   :  { %v381_v22 = vadd.f32 %v380_v21, %v379_v18 }
 0x304   :  { %v382_v23 = vrot.slane %v381_v22, 2 }
 0x306   :  { %v383_v27 = vadd.f32 %v382_v23, %v381_v22 }
 0x308   :  { %v384_v32 = vrot.slane %v383_v27, 1 }
 0x309   :  { %v640_v12 = vpop.xlane.xlu0 %639 }
 0x30a   :  { %v385_v38 = vadd.f32 %v384_v32, %v383_v27 }
 0x330   :  { %v561_v52 = vpop.f32.mrf.mxu2 }
 0x331   :  { %746 = vmatmul.msk.f32.vlgmr.msrb.gmra.mxu3 %vm166_vm2, %v561_v52  ;;  %v568_v1 = vrot.slane %v561_v52, 4 }
 0x338   :  { %v564_v44 = vpop.f32.mrf.mxu2 }
 0x339   :  { %747 = vmatmul.msk.f32.vlgmr.msra.gmra.mxu3 %vm166_vm2, %v564_v44 }
 0x3b4   :  { %v589_v63 = vpop.f32.mrf.mxu3 }
 0x3b5   :  { %v590_v2 = vadd.f32 %v589_v63, %v568_v1 }
 0x3bc   :  { %v612_v3 = vpop.f32.mrf.mxu3 }
 0x3bd   :  { %v615_v4 = vadd.f32 %v612_v3, %v590_v2 }
 0x3bf   :  { %v616_v5 = vadd.f32 %v615_v4, %v363_v19 }
 0x3c1   :  { %618 = vst.msk [vmem:[#allocation5 + $0x4] sm:$0xf] %vm366_vm5, %v616_v5  ;;  %v624_v6 = vsub.f32 %v616_v5, %v1012_v28  ;;  %v641_v28 = vmul.f32 4.0, %v640_v12 }
 0x3c2   :  { %673 = dma.vmem_to_hbm [thread:$0]  %s666_s17, 128, %s668_s16, [#allocation3], %s834_s18, %s834_s18, %s835_s19  }
 0x3c3   :  { %v625_v7 = vmul.f32 %v749_v60, %v624_v6  ;;  %v642_v15 = vadd.f32 %v641_v28, %v390_v13 }
 0x3c5   :  { %v626_v8 = vmul.f32 %v625_v7, %v625_v7  ;;  %v643_v16 = vmax.f32 %v642_v15, 1.0 }
 0x3c7   :  { %v627_v10 = vsel %vm366_vm5, %v626_v8, 0.0  ;;  %762 = vrcp.f32 %v643_v16  ;;  %vm649_vm7 = vweird.f32 %v643_v16  ;;  %v655_v31 = vand.u32 2147483648, %v643_v16 }
 0x3c8   :  { %628 = vadd.xlane.f32.xlu2 %v627_v10  ;;  %v653_v35 = vand.u32 2147483647, %v643_v16 }
 0x3c9   :  { %v656_v37 = vor.u32 1.1754944e-38, %v655_v31 }
 0x3ca   :  { %vm654_vm10 = vcmp.eq.f32.partialorder %v653_v35, 8.507059e+37 }
 0x3cd   :  { %v763_v9 = vpop.eup %762 }
 0x3ce   :  { %v645_v14 = vmul.f32 %v763_v9, %v643_v16  ;;  %vm650_vm8 = vweird.f32 %v763_v9 }
 0x3cf   :  { %vm651_vm9 = vmor %vm649_vm7, %vm650_vm8 }
 0x3d0   :  { %v646_v24 = vsub.f32 1.0, %v645_v14 }
 0x3d2   :  { %v647_v29 = vmul.f32 %v763_v9, %v646_v24 }
 0x3d4   :  { %v648_v34 = vadd.f32 %v763_v9, %v647_v29 }
 0x3d6   :  { %v652_v40 = vsel %vm651_vm9, %v763_v9, %v648_v34 }
 0x3d7   :  { %v657_v42 = vsel %vm654_vm10, %v656_v37, %v652_v40 }
 0x43b   :  { %v629_v25 = vpop.xlane.xlu2 %628 }
 0x43c   :  { %v630_v26 = vsel %vm109_vm0, %v629_v25, 0.0 }
 0x43d   :  { %v631_v19 = vrot.slane %v630_v26, 4 }
 0x43f   :  { %v632_v20 = vadd.f32 %v631_v19, %v630_v26 }
 0x441   :  { %v633_v30 = vrot.slane %v632_v20, 2 }
 0x443   :  { %v634_v33 = vadd.f32 %v633_v30, %v632_v20 }
 0x445   :  { %v635_v36 = vrot.slane %v634_v33, 1 }
 0x447   :  { %v636_v39 = vadd.f32 %v635_v36, %v634_v33 }
 0x449   :  { %v637_v41 = vadd.f32 %v636_v39, %v385_v38 }
 0x44b   :  { %v658_v43 = vmul.f32 %v657_v42, %v637_v41 }
 0x44d   :  { %660 = vst.msk [vmem:[#allocation6] sm:$0x1] %vm659_vm11, %v658_v43 }
 0x44e   :  { %684 = dma.vmem_to_hbm [thread:$0]  %s680_s2, 16, %s682_s21, [#allocation7]  }
 0x44f   :  { %826 = dma.done.wait [#allocation3], 128  }
 0x450   :  { %827 = vsyncadd [#allocation3], 4294967168 }
 0x451   :  { %828 = dma.done.wait [#allocation7], 16  }
 0x452   :  { %829 = vsyncadd [#allocation7], 4294967280 }
 0x453   :  { %693 = vsyncpa [#allocation3], 1 }
 0x454   :  { %694 = vsyncpa [#allocation7], 1 }
 0x455   :  { %695 = vsyncpa [#allocation4], 1 }

</bundles_post_ra>
